<compile_context>
chip_gen: v7x
topology: tpu7x:2x2x1
jax: 0.10.0
libtpu: 0.0.40
codegen_flags: <defaults>
</compile_context>

<pallas_src>
import functools

import jax
import jax.numpy as jnp
from jax.experimental import pallas as pl
from jax.experimental.pallas import tpu as pltpu


# ---------------------------------------------------------------------------
# Fused kernel: conv5x5/s2/p1 + ReLU + BN(eval) + global-avg-pool + log_softmax
# ---------------------------------------------------------------------------
def _testnet_fused_kernel(x_ref, w_ref, scale_ref, bias_ref, o_ref, xcol_ref,
                          *, hout, wout, cout, cin, ksize, stride, pad):
  """One batch element per grid step.

  x_ref:     (H, W*Cin)  f32  input image with (W, C) merged onto lanes
  w_ref:     (ksize*PL, wout*cout) bf16  block-Toeplitz folded conv weight
  scale_ref: (1, cout)   f32  gamma/sqrt(var+eps) / (hout*wout)
  bias_ref:  (1, cout)   f32  beta - mean*gamma/sqrt(var+eps)
  o_ref:     (1, cout)   f32  log-probabilities
  xcol_ref:  (hout, ksize*PL) f32 VMEM scratch (PL = 128-aligned phase width)
  """
  h_in, wc = x_ref.shape                    # H, W*Cin
  phase_lanes = xcol_ref.shape[1] // ksize  # 128-aligned (W + 2*pad)*Cin

  # 1) Build the lane-folded im2col slab in VMEM.  The memset supplies the
  #    conv zero-padding, so no padded copy of the input ever exists in HBM.
  xcol_ref[...] = jnp.zeros_like(xcol_ref)
  for r in range(ksize):                    # kernel-row phase r
    row0 = r - pad                          # input row feeding output row 0
    i0 = 0 if row0 >= 0 else (-row0 + stride - 1) // stride
    i1 = min(hout, (h_in - 1 - row0) // stride + 1)
    if i1 > i0:
      lane0 = r * phase_lanes + pad * cin
      xcol_ref[i0:i1, lane0:lane0 + wc] = (
          x_ref[pl.ds(row0 + i0 * stride, i1 - i0, stride), :])

  # 2) Single lane-dense bf16 MXU matmul -> (hout, wout*cout) f32 conv output.
  acc = jnp.dot(xcol_ref[...].astype(jnp.bfloat16), w_ref[...],
                preferred_element_type=jnp.float32)

  # 3) ReLU (the module applies ReLU before BatchNorm).
  y = jnp.maximum(acc, 0.0)

  # 4) Global average pool (AvgPool2d(14) on a 14x14 map) + folded BatchNorm.
  rows = jnp.sum(y, axis=0, keepdims=True)            # (1, wout*cout)
  ch = rows[:, 0:cout]
  for j in range(1, wout):                             # fold wout lane groups
    ch = ch + rows[:, j * cout:(j + 1) * cout]         # (1, cout)
  logits = ch * scale_ref[...] + bias_ref[...]         # scale includes 1/(h*w)

  # 5) log_softmax over the 10 classes.
  m = jnp.max(logits, axis=-1, keepdims=True)
  z = logits - m
  lse = jnp.log(jnp.sum(jnp.exp(z), axis=-1, keepdims=True))
  o_ref[...] = (z - lse).astype(o_ref.dtype)


# ---------------------------------------------------------------------------
# Weight folding: OIHW conv weight -> block-Toeplitz (ksize*PL, wout*cout)
# so that  xcol @ w_fold  ==  conv(x)  in the lane-dense (hout, wout*cout)
# layout.  Done once at setup (parameter prep / layout plumbing).
# ---------------------------------------------------------------------------
def _fold_conv_weight(w_oihw, *, stride, pad, wout, phase_lanes):
  cout, cin, kh, kw = w_oihw.shape
  w_hwio = jnp.transpose(w_oihw, (2, 3, 1, 0))          # (kh, kw, cin, cout)
  shape = (kh, kw, cin, wout, cout)
  kh_i = jnp.arange(kh).reshape(kh, 1, 1, 1, 1)
  kw_i = jnp.arange(kw).reshape(1, kw, 1, 1, 1)
  ci_i = jnp.arange(cin).reshape(1, 1, cin, 1, 1)
  j_i = jnp.arange(wout).reshape(1, 1, 1, wout, 1)
  co_i = jnp.arange(cout).reshape(1, 1, 1, 1, cout)
  rows = jnp.broadcast_to(
      kh_i * phase_lanes + (stride * j_i + kw_i) * cin + ci_i, shape)
  cols = jnp.broadcast_to(j_i * cout + co_i, shape)
  vals = jnp.broadcast_to(w_hwio[:, :, :, None, :], shape)
  folded = jnp.zeros((kh * phase_lanes, wout * cout), jnp.float32)
  folded = folded.at[rows.ravel(), cols.ravel()].set(vals.ravel())
  return folded.astype(jnp.bfloat16)


# ---------------------------------------------------------------------------
# Wrapper
# ---------------------------------------------------------------------------
def testnet_forward(x_nchw, w_oihw, gamma, beta, running_mean, running_var,
                    *, stride=2, pad=1, eps=1e-5):
  n, cin, h, w = x_nchw.shape
  cout, _, kh, kw = w_oihw.shape
  hout = (h + 2 * pad - kh) // stride + 1
  wout = (w + 2 * pad - kw) // stride + 1
  # AvgPool2d(kernel_size=14) followed by view(-1, 10) requires a 14x14 map.
  assert hout == 14 and wout == 14, (hout, wout)

  # Layout plumbing only (no compute): NCHW -> (N, H, W*C) so that the merged
  # (W, C) axis is the lane axis inside the kernel.
  x2 = jnp.transpose(x_nchw, (0, 2, 3, 1)).reshape(n, h, w * cin)

  lanes = (w + 2 * pad) * cin
  phase_lanes = ((lanes + 127) // 128) * 128            # 128-lane aligned phase

  w_fold = _fold_conv_weight(w_oihw, stride=stride, pad=pad, wout=wout,
                             phase_lanes=phase_lanes)
  s = gamma / jnp.sqrt(running_var + eps)
  scale = (s / (hout * wout)).reshape(1, cout).astype(jnp.float32)
  bias = (beta - running_mean * s).reshape(1, cout).astype(jnp.float32)

  kernel = functools.partial(
      _testnet_fused_kernel, hout=hout, wout=wout, cout=cout, cin=cin,
      ksize=kh, stride=stride, pad=pad)

  out = pl.pallas_call(
      kernel,
      out_shape=jax.ShapeDtypeStruct((n, 1, cout), jnp.float32),
      grid_spec=pltpu.PrefetchScalarGridSpec(
          num_scalar_prefetch=0,
          grid=(n,),
          in_specs=[
              pl.BlockSpec((None, h, w * cin), lambda i: (i, 0, 0)),
              pl.BlockSpec((kh * phase_lanes, wout * cout), lambda i: (0, 0)),
              pl.BlockSpec((1, cout), lambda i: (0, 0)),
              pl.BlockSpec((1, cout), lambda i: (0, 0)),
          ],
          out_specs=pl.BlockSpec((None, 1, cout), lambda i: (i, 0, 0)),
          scratch_shapes=[pltpu.VMEM((hout, kh * phase_lanes), jnp.float32)]),
      compiler_params=pltpu.CompilerParams(
          dimension_semantics=("parallel",),
          vmem_limit_bytes=32 * 1024 * 1024),
  )(x2, w_fold, scale, bias)
  return out.reshape(n, cout)


# ---------------------------------------------------------------------------
# Pure-JAX reference (same bf16 conv inputs / f32 accumulation)
# ---------------------------------------------------------------------------
def ref_forward(x_nchw, w_oihw, gamma, beta, running_mean, running_var,
                *, stride=2, pad=1, eps=1e-5):
  x = jnp.transpose(x_nchw, (0, 2, 3, 1)).astype(jnp.bfloat16)
  w_hwio = jnp.transpose(w_oihw, (2, 3, 1, 0)).astype(jnp.bfloat16)
  y = jax.lax.conv_general_dilated(
      x, w_hwio, (stride, stride), [(pad, pad), (pad, pad)],
      dimension_numbers=("NHWC", "HWIO", "NHWC"),
      preferred_element_type=jnp.float32)
  y = jnp.maximum(y, 0.0)
  s = gamma / jnp.sqrt(running_var + eps)
  y = y * s + (beta - running_mean * s)
  g = jnp.mean(y, axis=(1, 2))          # AvgPool2d(14) on 14x14 + view(-1, 10)
  return jax.nn.log_softmax(g, axis=-1)


# ---------------------------------------------------------------------------
# Main
# ---------------------------------------------------------------------------
if __name__ == "__main__":
  key = jax.random.PRNGKey(0)
  N, CIN, H, W = 2, 3, 30, 30     # 30x30 input -> 14x14 conv map (AvgPool2d(14))
  COUT = 10

  ks = jax.random.split(key, 6)
  x = jax.random.normal(ks[0], (N, CIN, H, W), jnp.float32)
  w = 0.2 * jax.random.normal(ks[1], (COUT, CIN, 5, 5), jnp.float32)  # OIHW
  gamma = 1.0 + 0.1 * jax.random.normal(ks[2], (COUT,), jnp.float32)
  beta = 0.1 * jax.random.normal(ks[3], (COUT,), jnp.float32)
  running_mean = 0.1 * jax.random.normal(ks[4], (COUT,), jnp.float32)
  running_var = 1.0 + 0.1 * jax.random.uniform(ks[5], (COUT,), jnp.float32)

  out = jax.block_until_ready(
      testnet_forward(x, w, gamma, beta, running_mean, running_var))
  ref = jax.block_until_ready(
      ref_forward(x, w, gamma, beta, running_mean, running_var))

  assert out.shape == (N, COUT), out.shape
  max_err = float(jnp.max(jnp.abs(out - ref)))
  assert jnp.allclose(out, ref, rtol=2e-3, atol=2e-3), max_err

  print("KERNEL_OK")
</pallas_src>

<mosaic_0001>
module attributes {stable_mosaic.version = 11 : i64} {
  func.func @_testnet_fused_kernel(%arg0: i32, %arg1: memref<1x30x90xf32, #tpu.memory_space<vmem>>, %arg2: memref<640x140xbf16, #tpu.memory_space<vmem>>, %arg3: memref<1x10xf32, #tpu.memory_space<vmem>>, %arg4: memref<1x10xf32, #tpu.memory_space<vmem>>, %arg5: memref<1x1x10xf32, #tpu.memory_space<vmem>>, %arg6: memref<14x640xf32, #tpu.memory_space<vmem>>) attributes {dimension_semantics = [#tpu.dimension_semantics<parallel>], iteration_bounds = array<i64: 2>, scalar_prefetch = 0 : i64, scratch_operands = 1 : i64, tpu.core_type = #tpu.core_type<tc>, window_params = [{transform_indices = @transform_0, window_bounds = array<i64: 1, 30, 90>}, {pipeline_mode = #tpu.pipeline_mode<synchronous>, transform_indices = @transform_1, window_bounds = array<i64: 640, 140>}, {pipeline_mode = #tpu.pipeline_mode<synchronous>, transform_indices = @transform_2, window_bounds = array<i64: 1, 10>}, {pipeline_mode = #tpu.pipeline_mode<synchronous>, transform_indices = @transform_3, window_bounds = array<i64: 1, 10>}, {transform_indices = @transform_4, window_bounds = array<i64: 1, 1, 10>}]} {
    %cst = arith.constant 0.000000e+00 : f32
    %0 = vector.broadcast %cst : f32 to vector<14x640xf32>
    %c0 = arith.constant 0 : index
    %c0_0 = arith.constant 0 : index
    %1 = vector.load %arg6[%c0, %c0_0] : memref<14x640xf32, #tpu.memory_space<vmem>>, vector<14x640xf32>
    tpu.vector_store %arg6[%c0, %c0_0], %0 {strides = array<i32>} : memref<14x640xf32, #tpu.memory_space<vmem>>, vector<14x640xf32>,
    %c0_1 = arith.constant 0 : index
    %c1 = arith.constant 1 : index
    %c0_2 = arith.constant 0 : index
    %2 = tpu.strided_load %arg1[%c0_1, %c1, %c0_2] {strides = array<i32: 1, 2, 1>} : memref<1x30x90xf32, #tpu.memory_space<vmem>>, vector<1x13x90xf32>
    %3 = vector.shape_cast %2 : vector<1x13x90xf32> to vector<13x90xf32>
    %c1_3 = arith.constant 1 : index
    %c3 = arith.constant 3 : index
    %4 = vector.load %arg6[%c1_3, %c3] : memref<14x640xf32, #tpu.memory_space<vmem>>, vector<13x90xf32>
    tpu.vector_store %arg6[%c1_3, %c3], %3 {strides = array<i32>} : memref<14x640xf32, #tpu.memory_space<vmem>>, vector<13x90xf32>,
    %c0_4 = arith.constant 0 : index
    %c0_5 = arith.constant 0 : index
    %c0_6 = arith.constant 0 : index
    %5 = tpu.strided_load %arg1[%c0_4, %c0_5, %c0_6] {strides = array<i32: 1, 2, 1>} : memref<1x30x90xf32, #tpu.memory_space<vmem>>, vector<1x14x90xf32>
    %6 = vector.shape_cast %5 : vector<1x14x90xf32> to vector<14x90xf32>
    %c0_7 = arith.constant 0 : index
    %c131 = arith.constant 131 : index
    %7 = vector.load %arg6[%c0_7, %c131] : memref<14x640xf32, #tpu.memory_space<vmem>>, vector<14x90xf32>
    tpu.vector_store %arg6[%c0_7, %c131], %6 {strides = array<i32>} : memref<14x640xf32, #tpu.memory_space<vmem>>, vector<14x90xf32>,
    %c0_8 = arith.constant 0 : index
    %c1_9 = arith.constant 1 : index
    %c0_10 = arith.constant 0 : index
    %8 = tpu.strided_load %arg1[%c0_8, %c1_9, %c0_10] {strides = array<i32: 1, 2, 1>} : memref<1x30x90xf32, #tpu.memory_space<vmem>>, vector<1x14x90xf32>
    %9 = vector.shape_cast %8 : vector<1x14x90xf32> to vector<14x90xf32>
    %c0_11 = arith.constant 0 : index
    %c259 = arith.constant 259 : index
    %10 = vector.load %arg6[%c0_11, %c259] : memref<14x640xf32, #tpu.memory_space<vmem>>, vector<14x90xf32>
    tpu.vector_store %arg6[%c0_11, %c259], %9 {strides = array<i32>} : memref<14x640xf32, #tpu.memory_space<vmem>>, vector<14x90xf32>,
    %c0_12 = arith.constant 0 : index
    %c2 = arith.constant 2 : index
    %c0_13 = arith.constant 0 : index
    %11 = tpu.strided_load %arg1[%c0_12, %c2, %c0_13] {strides = array<i32: 1, 2, 1>} : memref<1x30x90xf32, #tpu.memory_space<vmem>>, vector<1x14x90xf32>
    %12 = vector.shape_cast %11 : vector<1x14x90xf32> to vector<14x90xf32>
    %c0_14 = arith.constant 0 : index
    %c387 = arith.constant 387 : index
    %13 = vector.load %arg6[%c0_14, %c387] : memref<14x640xf32, #tpu.memory_space<vmem>>, vector<14x90xf32>
    tpu.vector_store %arg6[%c0_14, %c387], %12 {strides = array<i32>} : memref<14x640xf32, #tpu.memory_space<vmem>>, vector<14x90xf32>,
    %c0_15 = arith.constant 0 : index
    %c3_16 = arith.constant 3 : index
    %c0_17 = arith.constant 0 : index
    %14 = tpu.strided_load %arg1[%c0_15, %c3_16, %c0_17] {strides = array<i32: 1, 2, 1>} : memref<1x30x90xf32, #tpu.memory_space<vmem>>, vector<1x14x90xf32>
    %15 = vector.shape_cast %14 : vector<1x14x90xf32> to vector<14x90xf32>
    %c0_18 = arith.constant 0 : index
    %c515 = arith.constant 515 : index
    %16 = vector.load %arg6[%c0_18, %c515] : memref<14x640xf32, #tpu.memory_space<vmem>>, vector<14x90xf32>
    tpu.vector_store %arg6[%c0_18, %c515], %15 {strides = array<i32>} : memref<14x640xf32, #tpu.memory_space<vmem>>, vector<14x90xf32>,
    %c0_19 = arith.constant 0 : index
    %c0_20 = arith.constant 0 : index
    %17 = vector.load %arg6[%c0_19, %c0_20] : memref<14x640xf32, #tpu.memory_space<vmem>>, vector<14x640xf32>
    %18 = arith.truncf %17 : vector<14x640xf32> to vector<14x640xbf16>
    %c0_21 = arith.constant 0 : index
    %c0_22 = arith.constant 0 : index
    %19 = vector.load %arg2[%c0_21, %c0_22] : memref<640x140xbf16, #tpu.memory_space<vmem>>, vector<640x140xbf16>
    %cst_23 = arith.constant dense<0.000000e+00> : vector<14x140xf32>
    %20 = tpu.matmul %18, %19, %cst_23 {dimension_numbers = #tpu.dot_dimension_numbers<[1], [0], [0], [1], [0, 0, 1, 1], [], []>} : vector<14x640xbf16>, vector<640x140xbf16>, vector<14x140xf32> -> vector<14x140xf32>
    %cst_24 = arith.constant 0.000000e+00 : f32
    %21 = vector.broadcast %cst_24 : f32 to vector<14x140xf32>
    %22 = arith.maximumf %20, %21 : vector<14x140xf32>
    %cst_25 = arith.constant dense<0.000000e+00> : vector<140xf32>
    %23 = vector.multi_reduction <add>, %22, %cst_25 [0] : vector<14x140xf32> to vector<140xf32>
    %24 = vector.shape_cast %23 : vector<140xf32> to vector<1x140xf32>
    %25 = vector.extract_strided_slice %24 {offsets = [0, 0], sizes = [1, 10], strides = [1, 1]} : vector<1x140xf32> to vector<1x10xf32>
    %26 = vector.extract_strided_slice %24 {offsets = [0, 10], sizes = [1, 10], strides = [1, 1]} : vector<1x140xf32> to vector<1x10xf32>
    %27 = arith.addf %25, %26 : vector<1x10xf32>
    %28 = vector.extract_strided_slice %24 {offsets = [0, 20], sizes = [1, 10], strides = [1, 1]} : vector<1x140xf32> to vector<1x10xf32>
    %29 = arith.addf %27, %28 : vector<1x10xf32>
    %30 = vector.extract_strided_slice %24 {offsets = [0, 30], sizes = [1, 10], strides = [1, 1]} : vector<1x140xf32> to vector<1x10xf32>
    %31 = arith.addf %29, %30 : vector<1x10xf32>
    %32 = vector.extract_strided_slice %24 {offsets = [0, 40], sizes = [1, 10], strides = [1, 1]} : vector<1x140xf32> to vector<1x10xf32>
    %33 = arith.addf %31, %32 : vector<1x10xf32>
    %34 = vector.extract_strided_slice %24 {offsets = [0, 50], sizes = [1, 10], strides = [1, 1]} : vector<1x140xf32> to vector<1x10xf32>
    %35 = arith.addf %33, %34 : vector<1x10xf32>
    %36 = vector.extract_strided_slice %24 {offsets = [0, 60], sizes = [1, 10], strides = [1, 1]} : vector<1x140xf32> to vector<1x10xf32>
    %37 = arith.addf %35, %36 : vector<1x10xf32>
    %38 = vector.extract_strided_slice %24 {offsets = [0, 70], sizes = [1, 10], strides = [1, 1]} : vector<1x140xf32> to vector<1x10xf32>
    %39 = arith.addf %37, %38 : vector<1x10xf32>
    %40 = vector.extract_strided_slice %24 {offsets = [0, 80], sizes = [1, 10], strides = [1, 1]} : vector<1x140xf32> to vector<1x10xf32>
    %41 = arith.addf %39, %40 : vector<1x10xf32>
    %42 = vector.extract_strided_slice %24 {offsets = [0, 90], sizes = [1, 10], strides = [1, 1]} : vector<1x140xf32> to vector<1x10xf32>
    %43 = arith.addf %41, %42 : vector<1x10xf32>
    %44 = vector.extract_strided_slice %24 {offsets = [0, 100], sizes = [1, 10], strides = [1, 1]} : vector<1x140xf32> to vector<1x10xf32>
    %45 = arith.addf %43, %44 : vector<1x10xf32>
    %46 = vector.extract_strided_slice %24 {offsets = [0, 110], sizes = [1, 10], strides = [1, 1]} : vector<1x140xf32> to vector<1x10xf32>
    %47 = arith.addf %45, %46 : vector<1x10xf32>
    %48 = vector.extract_strided_slice %24 {offsets = [0, 120], sizes = [1, 10], strides = [1, 1]} : vector<1x140xf32> to vector<1x10xf32>
    %49 = arith.addf %47, %48 : vector<1x10xf32>
    %50 = vector.extract_strided_slice %24 {offsets = [0, 130], sizes = [1, 10], strides = [1, 1]} : vector<1x140xf32> to vector<1x10xf32>
    %51 = arith.addf %49, %50 : vector<1x10xf32>
    %c0_26 = arith.constant 0 : index
    %c0_27 = arith.constant 0 : index
    %52 = vector.load %arg3[%c0_26, %c0_27] : memref<1x10xf32, #tpu.memory_space<vmem>>, vector<1x10xf32>
    %53 = arith.mulf %51, %52 : vector<1x10xf32>
    %c0_28 = arith.constant 0 : index
    %c0_29 = arith.constant 0 : index
    %54 = vector.load %arg4[%c0_28, %c0_29] : memref<1x10xf32, #tpu.memory_space<vmem>>, vector<1x10xf32>
    %55 = arith.addf %53, %54 : vector<1x10xf32>
    %cst_30 = arith.constant dense<0xFF800000> : vector<1xf32>
    %56 = vector.multi_reduction <maximumf>, %55, %cst_30 [1] : vector<1x10xf32> to vector<1xf32>
    %57 = vector.shape_cast %56 : vector<1xf32> to vector<1x1xf32>
    %58 = vector.broadcast %57 : vector<1x1xf32> to vector<1x10xf32>
    %59 = arith.subf %55, %58 : vector<1x10xf32>
    %60 = math.exp %59 : vector<1x10xf32>
    %cst_31 = arith.constant dense<0.000000e+00> : vector<1xf32>
    %61 = vector.multi_reduction <add>, %60, %cst_31 [1] : vector<1x10xf32> to vector<1xf32>
    %62 = vector.shape_cast %61 : vector<1xf32> to vector<1x1xf32>
    %63 = math.log %62 : vector<1x1xf32>
    %64 = vector.broadcast %63 : vector<1x1xf32> to vector<1x10xf32>
    %65 = arith.subf %59, %64 : vector<1x10xf32>
    %c0_32 = arith.constant 0 : index
    %c0_33 = arith.constant 0 : index
    %c0_34 = arith.constant 0 : index
    %66 = vector.load %arg5[%c0_32, %c0_33, %c0_34] : memref<1x1x10xf32, #tpu.memory_space<vmem>>, vector<1x1x10xf32>
    %67 = vector.shape_cast %66 : vector<1x1x10xf32> to vector<1x10xf32>
    %68 = vector.shape_cast %65 : vector<1x10xf32> to vector<1x1x10xf32>
    tpu.vector_store %arg5[%c0_32, %c0_33, %c0_34], %68 {strides = array<i32>} : memref<1x1x10xf32, #tpu.memory_space<vmem>>, vector<1x1x10xf32>,
    return
  }
  func.func @transform_0(%arg0: i32) -> (i32, i32, i32) {
    %c0_i32 = arith.constant 0 : i32
    %c0_i32_0 = arith.constant 0 : i32
    %c0_i32_1 = arith.constant 0 : i32
    return %arg0, %c0_i32, %c0_i32_0 : i32, i32, i32
  }
  func.func @transform_1(%arg0: i32) -> (i32, i32) {
    %c0_i32 = arith.constant 0 : i32
    %c0_i32_0 = arith.constant 0 : i32
    %c0_i32_1 = arith.constant 0 : i32
    return %c0_i32, %c0_i32_0 : i32, i32
  }
  func.func @transform_2(%arg0: i32) -> (i32, i32) {
    %c0_i32 = arith.constant 0 : i32
    %c0_i32_0 = arith.constant 0 : i32
    %c0_i32_1 = arith.constant 0 : i32
    return %c0_i32, %c0_i32_0 : i32, i32
  }
  func.func @transform_3(%arg0: i32) -> (i32, i32) {
    %c0_i32 = arith.constant 0 : i32
    %c0_i32_0 = arith.constant 0 : i32
    %c0_i32_1 = arith.constant 0 : i32
    return %c0_i32, %c0_i32_0 : i32, i32
  }
  func.func @transform_4(%arg0: i32) -> (i32, i32, i32) {
    %c0_i32 = arith.constant 0 : i32
    %c0_i32_0 = arith.constant 0 : i32
    %c0_i32_1 = arith.constant 0 : i32
    return %arg0, %c0_i32, %c0_i32_0 : i32, i32, i32
  }
}

</mosaic_0001>

<bundles_post_ra>
// kernel: tpu_custom_call.1
= control target key start
LH: loop header
LB: loop body
LE: loop exit
PB: predicated region body
PF: predicated region fallthrough
CT: control target
= control target key end

     0   :  { %9 = vsyncpa [#allocation4], 0  ;;  %s1850_s0 = inlined_call_operand.vmem [shape: f32[2,30,90], index: 0, kind: input, shape index: {}]   ;;  %s1851_s1 = inlined_call_operand.vmem [shape: bf16[640,140], index: 1, kind: input, shape index: {}]   ;;  %s1852_s2 = inlined_call_operand.vmem [shape: f32[1,10], index: 2, kind: input, shape index: {}]   ;;  %s1853_s3 = inlined_call_operand.vmem [shape: f32[1,10], index: 3, kind: input, shape index: {}]   ;;  %s1854_s4 = inlined_call_operand.hbm [shape: f32[2,1,10], index: 4, kind: output, shape index: {}]  }
   0x1   :  { %11 = vsyncpa [#allocation4 + $0x1], 0  ;;  %s1461_s15 = smov 0   ;;  %s1463_s16 = smov 0  }
   0x2   :  { %s1465_s17 = smov 0   ;;  %s1467_s18 = smov 0  }
   0x3 LB: > { %s1482_s19 = sadd.s32 4294967295, %s1417_s18   ;;  %s1072_s20 = sadd.s32 4294967294, %s1417_s18   ;;  %s1417_s18 = sphi %s1467_s18, %s1860_s18   ;;  %s1413_s17 = sphi %s1465_s17, %s1859_s17   ;;  %s1409_s16 = sphi %s1463_s16, %s1858_s16   ;;  %s1405_s15 = sphi %s1461_s15, %s1857_s15  }
   0x4   : > { %s1486_s21 = sadd.s32 1, %s1417_s18   ;;  %s113_s22 = sadd.s32 1, %s1413_s17 }
   0x5   : > { %s110_s23 = ssub.s32 %s1417_s18, %s1486_s21  ;;  %p123_p0 = scmp.ne.s32.totalorder %s1413_s17, %s1409_s16 }
   0x6   : > { %p111_p1 = scmp.eq.s32.totalorder %s110_s23, 0  ;;  %p124_p2 = scmp.eq.s32.totalorder %s1482_s19, 1 }
   0x7   : > { %p129_p3 = scmp.ne.s32.totalorder %s1409_s16, %s1405_s15  ;;  %p130_p4 = scmp.eq.s32.totalorder %s1072_s20, 1 }
   0x8   : > { %s1497_s24 = scalar_select %p111_p1, %s1413_s17, %s113_s22  }
   0x9   : > { %p1499_p5 = por %p124_p2, %p123_p0  ;;  %p1503_p6 = por %p130_p4, %p129_p3 }
   0xa   : > { %p1075_p7 = scmp.ge.s32.totalorder %s1417_s18, 1  ;;  %p165_p8 = scmp.lt.s32.totalorder %s1417_s18, 3 }
   0xc   : > { %p166_p9 = pnand %p1075_p7, %p165_p8 }
   0xd   : > { %p190_p10 = scmp.lt.s32.totalorder (!%p166_p9), %s1482_s19, 1  ;;  %v1234_v0 = vld [vmem:[%s1851_s1 + $0x104] ss:$8 sps:$4 sm:$0xff] (!%p166_p9)   ;;  %v1236_v1 = vld [vmem:[%s1851_s1 + $0x100] ss:$8 sps:$4 sm:$0xff] (!%p166_p9)   ;;  %v1419_v3 = vmov (!%p166_p9), 0.0  }
   0xe   : > { %169 = sbr.rel (%p166_p9) target bundleno = 899 (0x383), region = 36  ;;  %v1237_v2 = vld [vmem:[%s1851_s1 + $0x114] ss:$8 sps:$4 sm:$0xff] (!%p166_p9)   ;;  %199 = vst [vmem:[#allocation2 + $0x18] sm:$0xff] (!%p166_p9), %v1419_v3  ;;  %196 = vst [vmem:[#allocation2] sm:$0xff] (!%p166_p9), %v1419_v3  ;;  %818 = vmatprep.subr.bf16.mxu0 (!%p166_p9), %v1234_v0  ;;  %s1420_s22 = smov (!%p166_p9), 3  }
   0xf   : > { %197 = vst [vmem:[#allocation2 + $0x8] sm:$0xff] (!%p166_p9), %v1419_v3  ;;  %198 = vst [vmem:[#allocation2 + $0x10] sm:$0xff] (!%p166_p9), %v1419_v3  ;;  %819 = vmatpush1.bf16.msra.mxu0 (!%p166_p9), %v1236_v1  ;;  %v1239_v4 = vld [vmem:[%s1851_s1 + $0x110] ss:$8 sps:$4 sm:$0xff] (!%p166_p9)   ;;  %v1240_v5 = vld [vmem:[%s1851_s1 + $0x124] ss:$8 sps:$4 sm:$0xff] (!%p166_p9)  }
  0x10   : > { %200 = vst [vmem:[#allocation2 + $0x20] sm:$0xff] (!%p166_p9), %v1419_v3  ;;  %201 = vst [vmem:[#allocation2 + $0x28] sm:$0x3f] (!%p166_p9), %v1419_v3  ;;  %820 = vmatprep.subr.bf16.mxu0 (!%p166_p9), %v1237_v2  ;;  %v1242_v9 = vld [vmem:[%s1851_s1 + $0x120] ss:$8 sps:$4 sm:$0xff] (!%p166_p9)   ;;  %vm212_vm0 = vcmask (!%p166_p9), 1040384  }
  0x11   : > { %202 = vst [vmem:[#allocation2 + $0x30] sm:$0x3f] (!%p166_p9), %v1419_v3  ;;  %203 = vst [vmem:[#allocation2 + $0x38] sm:$0x3f] (!%p166_p9), %v1419_v3  ;;  %v1243_v11 = vld [vmem:[%s1851_s1 + $0x134] ss:$8 sps:$4 sm:$0xff] (!%p166_p9)  }
  0x12   : > { %204 = vst [vmem:[#allocation2 + $0x40] sm:$0x3f] (!%p166_p9), %v1419_v3  ;;  %205 = vst [vmem:[#allocation2 + $0x48] sm:$0x3f] (!%p166_p9), %v1419_v3  ;;  %v1245_v14 = vld [vmem:[%s1851_s1 + $0x130] ss:$8 sps:$4 sm:$0xff] (!%p166_p9)  }
  0x13   : > { %821 = vmatpush1.bf16.msra.mxu0 (!%p166_p9), %v1239_v4  ;;  %v1246_v19 = vld [vmem:[%s1851_s1 + $0x144] ss:$8 sps:$4 sm:$0xff] (!%p166_p9)   ;;  %v1257_v21 = vld [vmem:[%s1851_s1] ss:$8 sps:$4 sm:$0xff] (!%p166_p9)   ;;  %v1249_v24 = vld [vmem:[%s1851_s1 + $0x154] ss:$8 sps:$4 sm:$0xff] (!%p166_p9)  }
  0x14   : > { %822 = vmatprep.subr.bf16.mxu0 (!%p166_p9), %v1240_v5  ;;  %v1254_v20 = vld [vmem:[%s1851_s1 + $0x4] ss:$8 sps:$4 sm:$0xff] (!%p166_p9)   ;;  %v1248_v23 = vld [vmem:[%s1851_s1 + $0x140] ss:$8 sps:$4 sm:$0xff] (!%p166_p9)   ;;  %v1260_v25 = vld [vmem:[%s1851_s1 + $0x14] ss:$8 sps:$4 sm:$0xff] (!%p166_p9)  }
  0x15   : > { %s191_s5 = scalar_select %p190_p10, %s1482_s19, 1  ;;  %775 = vmatprep.subr.bf16.mxu1 %v1254_v20  ;;  %v1263_v28 = vld [vmem:[%s1851_s1 + $0x10] ss:$8 sps:$4 sm:$0xff]   ;;  %v1252_v30 = vld [vmem:[%s1851_s1 + $0x164] ss:$8 sps:$4 sm:$0xff]   ;;  %vm237_vm1 = vcmask 760856  }
  0x16   : > { %776 = vmatpush1.bf16.msra.mxu1 %v1257_v21  ;;  %v1251_v29 = vld [vmem:[%s1851_s1 + $0x150] ss:$8 sps:$4 sm:$0xff]   ;;  %v1266_v31 = vld [vmem:[%s1851_s1 + $0x24] ss:$8 sps:$4 sm:$0xff]   ;;  %v1269_v32 = vld [vmem:[%s1851_s1 + $0x20] ss:$8 sps:$4 sm:$0xff]  }
  0x17   : > { %s1170_s8 = sshll.u32 %s191_s5, 5  ;;  %823 = vmatpush1.bf16.msra.mxu0 %v1242_v9  ;;  %777 = vmatprep.subr.bf16.mxu1 %v1260_v25  ;;  %v1256_v33 = vld [vmem:[%s1851_s1 + $0x160] ss:$8 sps:$4 sm:$0xff]   ;;  %v1272_v34 = vld [vmem:[%s1851_s1 + $0x34] ss:$8 sps:$4 sm:$0xff]   ;;  %vm224_vm2 = vcmask 758808  }
  0x18   : > { %s1526_s13 = scalar_lea.vmem %s1850_s0, %s1170_s8  ;;  %824 = vmatprep.subr.bf16.mxu0 %v1243_v11  ;;  %v1258_v35 = vld [vmem:[%s1851_s1 + $0x174] ss:$8 sps:$4 sm:$0xff]   ;;  %v1275_v36 = vld [vmem:[%s1851_s1 + $0x30] ss:$8 sps:$4 sm:$0xff]   ;;  %v1278_v37 = vld [vmem:[%s1851_s1 + $0x44] ss:$8 sps:$4 sm:$0xff]  }
  0x19   : > { %v1083_v6 = vld [vmem:[%s1526_s13 + $0x2] ss:$2 sm:$0xff]  ;;  %v1081_v7 = vld [vmem:[%s1526_s13 + $0x1] ss:$2 sm:$0xff]  ;;  %v1284_v41 = vld [vmem:[%s1851_s1 + $0x54] ss:$8 sps:$4 sm:$0xff]  }
  0x1a   : > { %258 = vrot.lane.b32.xlu0 %v1083_v6, %s1420_s22  ;;  %244 = vrot.lane.b32.xlu1 %v1081_v7, %s1420_s22  ;;  %v1084_v8 = vld [vmem:[%s1526_s13 + $0x12] ss:$2 sm:$0x3f]  ;;  %v1082_v10 = vld [vmem:[%s1526_s13 + $0x11] ss:$2 sm:$0x3f] }
  0x1b   : > { %v1078_v12 = vld [vmem:[%s1526_s13 + $0x1] ss:$2 sm:$0xff]  ;;  %v1079_v13 = vld [vmem:[%s1526_s13 + $0x11] ss:$2 sm:$0x1f]  ;;  %825 = vmatpush1.bf16.msra.mxu0 %v1245_v14  ;;  %778 = vmatpush1.bf16.msra.mxu1 %v1263_v28  ;;  %vm222_vm3 = vcmask 760857  }
  0x1c   : > { %v226_v15 = vld [vmem:[%s1526_s13] ss:$2 sm:$0xff]  ;;  %v1080_v16 = vld [vmem:[%s1526_s13 + $0x10] ss:$2 sm:$0x3f]  ;;  %v213_v17 = vrot.slane %v1078_v12, 7  ;;  %826 = vmatprep.subr.bf16.mxu0 %v1246_v19  ;;  %779 = vmatprep.subr.bf16.mxu1 %v1266_v31 }
  0x1d   : > { %v214_v18 = vrot.slane %v1079_v13, 7  ;;  %v1085_v26 = vld [vmem:[%s1526_s13 + $0x3] ss:$2 sm:$0xff]  ;;  %v1086_v27 = vld [vmem:[%s1526_s13 + $0x13] ss:$2 sm:$0x3f] }
  0x1e   : > { %260 = vrot.lane.b32.xlu0 %v1084_v8, %s1420_s22  ;;  %246 = vrot.lane.b32.xlu1 %v1082_v10, %s1420_s22  ;;  %v1262_v38 = vld [vmem:[%s1851_s1 + $0x170] ss:$8 sps:$4 sm:$0xff]   ;;  %v1264_v39 = vld [vmem:[%s1851_s1 + $0x184] ss:$8 sps:$4 sm:$0xff]   ;;  %vm908_vm4 = vcmask 1045504   ;;  %vm917_vm5 = vcmask 97280  }
  0x1f   : > { %v215_v22 = vsel %vm212_vm0, %v213_v17, %v214_v18  ;;  %827 = vmatpush1.bf16.msra.mxu0 %v1248_v23  ;;  %780 = vmatpush1.bf16.msra.mxu1 %v1269_v32  ;;  %v1281_v40 = vld [vmem:[%s1851_s1 + $0x40] ss:$8 sps:$4 sm:$0xff]   ;;  %v1270_v43 = vld [vmem:[%s1851_s1 + $0x194] ss:$8 sps:$4 sm:$0xff]   ;;  %v1287_v44 = vld [vmem:[%s1851_s1 + $0x50] ss:$8 sps:$4 sm:$0xff]  }
  0x20   : > { %828 = vmatprep.subr.bf16.mxu0 %v1249_v24  ;;  %781 = vmatprep.subr.bf16.mxu1 %v1272_v34  ;;  %v1268_v42 = vld [vmem:[%s1851_s1 + $0x180] ss:$8 sps:$4 sm:$0xff]   ;;  %v1290_v47 = vld [vmem:[%s1851_s1 + $0x64] ss:$8 sps:$4 sm:$0xff]   ;;  %v1274_v48 = vld [vmem:[%s1851_s1 + $0x190] ss:$8 sps:$4 sm:$0xff]  }
  0x21   : > { %v307_v45 = vld [vmem:[%s1851_s1 + $0x60] sm:$0xff]  ;;  %v308_v46 = vld [vmem:[%s1851_s1 + $0x68] sm:$0xff]  ;;  %v309_v50 = vld [vmem:[%s1851_s1 + $0x70] sm:$0xff]  ;;  %vm919_vm6 = vcmask 95232   ;;  %s1422_s5 = smov 108   ;;  %s1423_s6 = smov 118  }
  0x22   : > { %233 = vrot.lane.b32.xlu1 %v1080_v16, %s1420_s22  ;;  %231 = vrot.lane.b32.xlu0 %v226_v15, %s1420_s22  ;;  %v1276_v49 = vld [vmem:[%s1851_s1 + $0x1a4] ss:$8 sps:$4 sm:$0xff]   ;;  %v1099_v51 = vcombine.low %v307_v45, %v308_v46  ;;  %v310_v52 = vld [vmem:[%s1851_s1 + $0x78] sm:$0xff]  ;;  %s1424_s7 = smov 88   ;;  %s1425_s8 = smov 98   ;;  %vm978_vm7 = vcmask 64512  }
  0x23   : > { %829 = vmatpush1.bf16.msra.mxu0 %v1251_v29  ;;  %782 = vmatpush1.bf16.msra.mxu1 %v1275_v36  ;;  %v1295_v53 = vld [vmem:[%s1851_s1 + $0x74] ss:$8 sps:$4 sm:$0xff]   ;;  %v1280_v54 = vld [vmem:[%s1851_s1 + $0x1a0] ss:$8 sps:$4 sm:$0xff]   ;;  %v1101_v56 = vcombine.low %v309_v50, %v310_v52  ;;  %v1300_v57 = vld [vmem:[%s1851_s1 + $0x84] ss:$8 sps:$4 sm:$0xff]  }
  0x24   : > { %830 = vmatprep.subr.bf16.mxu0 %v1252_v30  ;;  %783 = vmatprep.subr.bf16.mxu1 %v1278_v37  ;;  %v1282_v55 = vld [vmem:[%s1851_s1 + $0x1b4] ss:$8 sps:$4 sm:$0xff]   ;;  %v1286_v58 = vld [vmem:[%s1851_s1 + $0x1b0] ss:$8 sps:$4 sm:$0xff]   ;;  %v1288_v59 = vld [vmem:[%s1851_s1 + $0x1c4] ss:$8 sps:$4 sm:$0xff]  }
  0x25   : > { %v1303_v60 = vld [vmem:[%s1851_s1 + $0x80] ss:$8 sps:$4 sm:$0xff]   ;;  %v1306_v61 = vld [vmem:[%s1851_s1 + $0x94] ss:$8 sps:$4 sm:$0xff]   ;;  %v1309_v0 = vld [vmem:[%s1851_s1 + $0x90] ss:$8 sps:$4 sm:$0xff]  }
  0x26   : > { %216 = vrot.lane.b32.xlu0 %v213_v17, %s1420_s22  ;;  %218 = vrot.lane.b32.xlu1 %v215_v22, %s1420_s22  ;;  %v1292_v62 = vld [vmem:[%s1851_s1 + $0x1c0] ss:$8 sps:$4 sm:$0xff]   ;;  %v1293_v63 = vld [vmem:[%s1851_s1 + $0x1d4] ss:$8 sps:$4 sm:$0xff]   ;;  %s1426_s9 = smov 68   ;;  %s1427_s13 = smov 78  }
  0x27   : > { %831 = vmatpush1.bf16.msra.mxu0 %v1256_v33  ;;  %784 = vmatpush1.bf16.msra.mxu1 %v1281_v40  ;;  %v1313_v1 = vld [vmem:[%s1851_s1 + $0xa4] ss:$8 sps:$4 sm:$0xff]   ;;  %v1297_v2 = vld [vmem:[%s1851_s1 + $0x1d0] ss:$8 sps:$4 sm:$0xff]   ;;  %v1315_v4 = vld [vmem:[%s1851_s1 + $0xa0] ss:$8 sps:$4 sm:$0xff]  }
  0x28   : > { %832 = vmatprep.subr.bf16.mxu0 %v1258_v35  ;;  %785 = vmatprep.subr.bf16.mxu1 %v1284_v41  ;;  %v1298_v3 = vld [vmem:[%s1851_s1 + $0x1e4] ss:$8 sps:$4 sm:$0xff]   ;;  %v1319_v5 = vld [vmem:[%s1851_s1 + $0xb4] ss:$8 sps:$4 sm:$0xff]   ;;  %v1302_v6 = vld [vmem:[%s1851_s1 + $0x1e0] ss:$8 sps:$4 sm:$0xff]  }
  0x29   : > { %v1304_v7 = vld [vmem:[%s1851_s1 + $0x1f4] ss:$8 sps:$4 sm:$0xff]   ;;  %v1321_v8 = vld [vmem:[%s1851_s1 + $0xb0] ss:$8 sps:$4 sm:$0xff]   ;;  %v1325_v9 = vld [vmem:[%s1851_s1 + $0xc4] ss:$8 sps:$4 sm:$0xff]  }
  0x2a   : > { %272 = vrot.lane.b32.xlu0 %v1085_v26, %s1420_s22  ;;  %274 = vrot.lane.b32.xlu1 %v1086_v27, %s1420_s22  ;;  %v1308_v10 = vld [vmem:[%s1851_s1 + $0x1f0] ss:$8 sps:$4 sm:$0xff]   ;;  %v1312_v11 = vld [vmem:[%s1851_s1 + $0x204] ss:$8 sps:$4 sm:$0xff]   ;;  %s1428_s10 = smov 48   ;;  %s1429_s11 = smov 58  }
  0x2b   : > { %833 = vmatpush1.bf16.msra.mxu0 %v1262_v38  ;;  %786 = vmatpush1.bf16.msra.mxu1 %v1287_v44  ;;  %v1327_v12 = vld [vmem:[%s1851_s1 + $0xc0] ss:$8 sps:$4 sm:$0xff]   ;;  %v1331_v13 = vld [vmem:[%s1851_s1 + $0xd4] ss:$8 sps:$4 sm:$0xff]   ;;  %v1333_v14 = vld [vmem:[%s1851_s1 + $0xd0] ss:$8 sps:$4 sm:$0xff]  }
  0x2c   : > { %834 = vmatprep.subr.bf16.mxu0 %v1264_v39  ;;  %787 = vmatprep.subr.bf16.mxu1 %v1290_v47  ;;  %v1337_v15 = vld [vmem:[%s1851_s1 + $0xe4] ss:$8 sps:$4 sm:$0xff]   ;;  %v1339_v16 = vld [vmem:[%s1851_s1 + $0xe0] ss:$8 sps:$4 sm:$0xff]   ;;  %v325_v17 = vld [vmem:[%s1851_s1 + $0xf0] sm:$0xff]  ;;  %s1430_s12 = smov 28  }
  0x2d   : > { %v326_v18 = vld [vmem:[%s1851_s1 + $0xf8] sm:$0xff]  ;;  %v1310_v34 = vld [vmem:[%s1851_s1 + $0x200] ss:$8 sps:$4 sm:$0xff]   ;;  %v1324_v44 = vld [vmem:[%s1851_s1 + $0x224] ss:$8 sps:$4 sm:$0xff]   ;;  %s1431_s14 = smov 38  }
  0x2e   : > { %v1343_v19 = vld [vmem:[%s1851_s1 + $0xf4] ss:$8 sps:$4 sm:$0xff]   ;;  %v1117_v20 = vcombine.low %v325_v17, %v326_v18  ;;  %v1316_v41 = vld [vmem:[%s1851_s1 + $0x210] ss:$8 sps:$4 sm:$0xff]   ;;  %v1322_v47 = vld [vmem:[%s1851_s1 + $0x220] ss:$8 sps:$4 sm:$0xff]  }
  0x2f   : > { %835 = vmatpush1.bf16.msra.mxu0 %v1268_v42  ;;  %788 = vmatpush1.bf16.msra.mxu1 %v1099_v51  ;;  %v1318_v36 = vld [vmem:[%s1851_s1 + $0x214] ss:$8 sps:$4 sm:$0xff]   ;;  %v1328_v50 = vld [vmem:[%s1851_s1 + $0x230] ss:$8 sps:$4 sm:$0xff]   ;;  %v1336_v51 = vld [vmem:[%s1851_s1 + $0x244] ss:$8 sps:$4 sm:$0xff]  }
  0x30   : > { %836 = vmatprep.subr.bf16.mxu0 %v1270_v43  ;;  %789 = vmatprep.subr.bf16.mxu1 %v1295_v53  ;;  %v1421_v43 = vmov 0   ;;  %v1334_v52 = vld [vmem:[%s1851_s1 + $0x240] ss:$8 sps:$4 sm:$0xff]   ;;  %v1342_v53 = vld [vmem:[%s1851_s1 + $0x254] ss:$8 sps:$4 sm:$0xff]   ;;  %s1432_s20 = smov 8  }
  0x31   : > { %s1433_s23 = smov 18   ;;  %s1434_s27 = smov 126   ;;  %vm990_vm8 = vcmask 73728  }
  0x33   : > { %837 = vmatpush1.bf16.msra.mxu0 %v1274_v48  ;;  %790 = vmatpush1.bf16.msra.mxu1 %v1101_v56  ;;  %v1345_v56 = vld [vmem:[%s1851_s1 + $0x260] ss:$8 sps:$4 sm:$0xff]  }
  0x34   : > { %838 = vmatprep.subr.bf16.mxu0 %v1276_v49  ;;  %791 = vmatprep.subr.bf16.mxu1 %v1300_v57  ;;  %v1330_v49 = vld [vmem:[%s1851_s1 + $0x234] ss:$8 sps:$4 sm:$0xff]  }
  0x35   : > { %v1350_v57 = vld [vmem:[%s1851_s1 + $0x274] ss:$8 sps:$4 sm:$0xff]  }
  0x37   : > { %839 = vmatpush1.bf16.msra.mxu0 %v1280_v54  ;;  %792 = vmatpush1.bf16.msra.mxu1 %v1303_v60  ;;  %v1340_v54 = vld [vmem:[%s1851_s1 + $0x250] ss:$8 sps:$4 sm:$0xff]  }
  0x38   : > { %840 = vmatprep.subr.bf16.mxu0 %v1282_v55  ;;  %793 = vmatprep.subr.bf16.mxu1 %v1306_v61  ;;  %v1347_v55 = vld [vmem:[%s1851_s1 + $0x264] ss:$8 sps:$4 sm:$0xff]  }
  0x3b   : > { %841 = vmatpush1.bf16.msra.mxu0 %v1286_v58  ;;  %794 = vmatpush1.bf16.msra.mxu1 %v1309_v0  ;;  %v1348_v58 = vld [vmem:[%s1851_s1 + $0x270] ss:$8 sps:$4 sm:$0xff]  }
  0x3c   : > { %842 = vmatprep.subr.bf16.mxu0 %v1288_v59  ;;  %795 = vmatprep.subr.bf16.mxu1 %v1313_v1 }
  0x3f   : > { %843 = vmatpush1.bf16.msra.mxu0 %v1292_v62  ;;  %796 = vmatpush1.bf16.msra.mxu1 %v1315_v4 }
  0x40   : > { %844 = vmatprep.subr.bf16.mxu0 %v1293_v63  ;;  %797 = vmatprep.subr.bf16.mxu1 %v1319_v5 }
  0x43   : > { %845 = vmatpush1.bf16.msra.mxu0 %v1297_v2  ;;  %798 = vmatpush1.bf16.msra.mxu1 %v1321_v8 }
  0x44   : > { %846 = vmatprep.subr.bf16.mxu0 %v1298_v3  ;;  %799 = vmatprep.subr.bf16.mxu1 %v1325_v9 }
  0x47   : > { %847 = vmatpush1.bf16.msra.mxu0 %v1302_v6  ;;  %800 = vmatpush1.bf16.msra.mxu1 %v1327_v12 }
  0x48   : > { %848 = vmatprep.subr.bf16.mxu0 %v1304_v7  ;;  %801 = vmatprep.subr.bf16.mxu1 %v1331_v13 }
  0x4b   : > { %849 = vmatpush1.bf16.msra.mxu0 %v1308_v10  ;;  %802 = vmatpush1.bf16.msra.mxu1 %v1333_v14 }
  0x4c   : > { %861 = vmatprep.subr.bf16.mxu0 %v1312_v11  ;;  %803 = vmatprep.subr.bf16.mxu1 %v1337_v15 }
  0x4f   : > { %804 = vmatpush1.bf16.msra.mxu1 %v1339_v16 }
  0x50   : > { %805 = vmatprep.subr.bf16.mxu1 %v1343_v19 }
  0x53   : > { %806 = vmatpush1.bf16.msra.mxu1 %v1117_v20 }
  0x8c   : > { %v259_v21 = vpop.permute.xlu0 %258  ;;  %v245_v22 = vpop.permute.xlu1 %244 }
  0x8d   : > { %264 = vst.msk [vmem:[#allocation2 + $0x18] sm:$0xff] %vm237_vm1, %v259_v21  ;;  %250 = vst.msk [vmem:[#allocation2 + $0x10] sm:$0xff] %vm237_vm1, %v245_v22 }
  0x90   : > { %v261_v23 = vpop.permute.xlu0 %260  ;;  %v247_v24 = vpop.permute.xlu1 %246 }
  0x91   : > { %265 = vst.msk [vmem:[#allocation2 + $0x40] sm:$0x3f] %vm224_vm2, %v261_v23  ;;  %251 = vst.msk [vmem:[#allocation2 + $0x38] sm:$0x3f] %vm224_vm2, %v247_v24 }
  0x94   : > { %v234_v25 = vpop.permute.xlu1 %233  ;;  %v232_v26 = vpop.permute.xlu0 %231  ;;  %v283_v27 = vld [vmem:[#allocation2 + $0x18] sm:$0xff]  ;;  %v282_v29 = vld [vmem:[#allocation2 + $0x10] sm:$0xff] }
  0x95   : > { %239 = vst.msk [vmem:[#allocation2 + $0x30] sm:$0x3f] %vm224_vm2, %v234_v25 }
  0x96   : > { %238 = vst.msk [vmem:[#allocation2 + $0x8] sm:$0xff] %vm237_vm1, %v232_v26 }
  0x98   : > { %v288_v28 = vld [vmem:[#allocation2 + $0x40] sm:$0x3f]  ;;  %v287_v30 = vld [vmem:[#allocation2 + $0x38] sm:$0x3f]  ;;  %v217_v31 = vpop.permute.xlu0 %216  ;;  %v219_v32 = vpop.permute.xlu1 %218 }
  0x99   : > { %v293_v33 = vpack.c.bf16 %v288_v28, %v283_v27  ;;  %v292_v35 = vpack.c.bf16 %v287_v30, %v282_v29  ;;  %223 = vst.msk [vmem:[#allocation2] sm:$0xfe] %vm222_vm3, %v217_v31 }
  0x9a   : > { %225 = vst.msk [vmem:[#allocation2 + $0x28] sm:$0x3f] %vm224_vm2, %v219_v32 }
  0x9b   : > { %850 = vmatprep.mubr.bf16.mxu0 %v293_v33 }
  0x9c   : > { %851 = vmatmul.mubr.bf16.vlgmr.msra.gmra.mrb[0].mxu0 %v292_v35  ;;  %v273_v37 = vpop.permute.xlu0 %272  ;;  %v275_v38 = vpop.permute.xlu1 %274  ;;  %v286_v40 = vld [vmem:[#allocation2 + $0x30] sm:$0x3f] }
  0x9d   : > { %v281_v39 = vld [vmem:[#allocation2 + $0x8] sm:$0xff]  ;;  %862 = vmatpush1.bf16.msra.mxu0 %v1310_v34  ;;  %278 = vst.msk [vmem:[#allocation2 + $0x20] sm:$0xff] %vm237_vm1, %v273_v37  ;;  %893 = vmatprep.mubr.bf16.mxu0 %v1421_v43 }
  0x9e   : > { %279 = vst.msk [vmem:[#allocation2 + $0x48] sm:$0x3f] %vm224_vm2, %v275_v38  ;;  %v291_v42 = vpack.c.bf16 %v286_v40, %v281_v39  ;;  %863 = vmatprep.subr.bf16.mxu0 %v1318_v36 }
  0xa0   : > { %807 = vmatprep.mubr.bf16.mxu1 %v291_v42  ;;  %v280_v45 = vld [vmem:[#allocation2] sm:$0xff] }
  0xa1   : > { %v285_v46 = vld [vmem:[#allocation2 + $0x28] sm:$0x3f]  ;;  %864 = vmatpush1.bf16.msra.mxu0 %v1316_v41 }
  0xa2   : > { %v290_v48 = vpack.c.bf16 %v285_v46, %v280_v45  ;;  %865 = vmatprep.subr.bf16.mxu0 %v1324_v44 }
  0xa4   : > { %808 = vmatmul.mubr.bf16.vlgmr.msra.gmra.mrb[0].mxu1 %v290_v48  ;;  %v284_v59 = vld [vmem:[#allocation2 + $0x20] sm:$0xff] }
  0xa5   : > { %866 = vmatpush1.bf16.msra.mxu0 %v1322_v47  ;;  %v289_v60 = vld [vmem:[#allocation2 + $0x48] sm:$0x3f] }
  0xa6   : > { %867 = vmatprep.subr.bf16.mxu0 %v1330_v49  ;;  %v294_v61 = vpack.c.bf16 %v289_v60, %v284_v59  ;;  %v988_v60 = vld [vmem:[%s1853_s3] sm:$0x1] }
  0xa9   : > { %868 = vmatpush1.bf16.msra.mxu0 %v1328_v50 }
  0xaa   : > { %869 = vmatprep.subr.bf16.mxu0 %v1336_v51 }
  0xad   : > { %870 = vmatpush1.bf16.msra.mxu0 %v1334_v52 }
  0xae   : > { %871 = vmatprep.subr.bf16.mxu0 %v1342_v53 }
  0xb1   : > { %872 = vmatpush1.bf16.msra.mxu0 %v1340_v54 }
  0xb2   : > { %873 = vmatprep.subr.bf16.mxu0 %v1347_v55 }
  0xb5   : > { %874 = vmatpush1.bf16.msra.mxu0 %v1345_v56 }
  0xb6   : > { %875 = vmatprep.subr.bf16.mxu0 %v1350_v57 }
  0xb9   : > { %876 = vmatpush1.bf16.msra.mxu0 %v1348_v58  ;;  %v986_v58 = vld [vmem:[%s1852_s2] sm:$0x1] }
  0xbc   : > { %894 = vmatmul.mubr.bf16.vlgmr.msra.gmra.mrb[0].mxu0 %v294_v61 }
 0x177   : > { %v809_v62 = vpop.f32.mrb[0].mxu1 }
 0x178   : > { %v811_v63 = vpop.f32.mrb[1].mxu1 }
 0x179   : > { %v813_v0 = vpop.f32.mrb[2].mxu1 }
 0x17a   : > { %v815_v1 = vpop.f32.mrb[3].mxu1 }
 0x18f   : > { %v895_v2 = vpop.f32.mrb[0].mxu0 }
 0x190   : > { %v1171_v3 = vadd.f32 %v895_v2, %v809_v62  ;;  %v897_v4 = vpop.f32.mrb[1].mxu0 }
 0x191   : > { %v1172_v5 = vadd.f32 %v897_v4, %v811_v63  ;;  %v899_v6 = vpop.f32.mrb[2].mxu0 }
 0x192   : > { %v1173_v7 = vadd.f32 %v899_v6, %v813_v0  ;;  %v901_v8 = vpop.f32.mrb[3].mxu0  ;;  %v904_v12 = vmax.f32 %v1171_v3, 0.0 }
 0x193   : > { %v905_v9 = vmax.f32 %v1172_v5, 0.0  ;;  %v1174_v10 = vadd.f32 %v901_v8, %v815_v1 }
 0x194   : > { %v906_v11 = vmax.f32 %v1173_v7, 0.0 }
 0x195   : > { %v907_v13 = vmax.f32 %v1174_v10, 0.0  ;;  %v918_v15 = vsel %vm917_vm5, %v905_v9, 0.0 }
 0x196   : > { %v909_v14 = vsel %vm908_vm4, %v906_v11, 0.0 }
 0x197   : > { %v910_v16 = vadd.f32 %v909_v14, %v904_v12  ;;  %v920_v17 = vsel %vm919_vm6, %v907_v13, 0.0 }
 0x198   : > { %v921_v18 = vadd.f32 %v920_v17, %v918_v15 }
 0x199   : > { %v911_v19 = vrot.slane %v910_v16, 4 }
 0x19a   : > { %v922_v25 = vrot.slane %v921_v18, 4 }
 0x19b   : > { %v912_v20 = vadd.f32 %v911_v19, %v910_v16 }
 0x19c   : > { %v923_v26 = vadd.f32 %v922_v25, %v921_v18 }
 0x19d   : > { %v913_v21 = vrot.slane %v912_v20, 2 }
 0x19e   : > { %v924_v27 = vrot.slane %v923_v26, 2 }
 0x19f   : > { %v914_v22 = vadd.f32 %v913_v21, %v912_v20 }
 0x1a0   : > { %v925_v28 = vadd.f32 %v924_v27, %v923_v26 }
 0x1a1   : > { %v915_v23 = vrot.slane %v914_v22, 1 }
 0x1a2   : > { %v926_v29 = vrot.slane %v925_v28, 1 }
 0x1a3   : > { %v916_v24 = vadd.f32 %v915_v23, %v914_v22 }
 0x1a4   : > { %v927_v30 = vadd.f32 %v926_v29, %v925_v28 }
 0x1a5   : > { %933 = vrot.lane.b32.xlu1 %v916_v24, %s1422_s5  ;;  %929 = vrot.lane.b32.xlu0 %v916_v24, %s1423_s6  ;;  %s188_s5 = sand.u32 1, %s1409_s16   ;;  %s1167_s6 = sshll.u32 %s1482_s19, 4 }
 0x1a6   : > { %s1435_s19 = smov [#allocation3]  }
 0x1a9   : > { %941 = vrot.lane.b32.xlu1 %v916_v24, %s1424_s7  ;;  %937 = vrot.lane.b32.xlu0 %v916_v24, %s1425_s8  ;;  %s189_s7 = scalar_lea.vmem [#allocation3], %s188_s5 }
 0x1aa   : > { %s1017_s8 = sshll.u32 %s189_s7, 4  ;;  %s1809_s8 = int_to_ptr.vmem [resolvable:$true] %s1017_s8 }
 0x1ad   : > { %949 = vrot.lane.b32.xlu1 %v916_v24, %s1426_s9  ;;  %945 = vrot.lane.b32.xlu0 %v916_v24, %s1427_s13 }
 0x1b1   : > { %957 = vrot.lane.b32.xlu1 %v916_v24, %s1428_s10  ;;  %953 = vrot.lane.b32.xlu0 %v916_v24, %s1429_s11  ;;  %s1807_s10 = scalar_lea.hbm %s1854_s4, %s1167_s6  ;;  %s1005_s11 = scalar_lea.sflag [#allocation4], %s188_s5 }
 0x1b5   : > { %965 = vrot.lane.b32.xlu1 %v916_v24, %s1430_s12  ;;  %961 = vrot.lane.b32.xlu0 %v916_v24, %s1431_s14  ;;  %s1355_s12 = scalar_lea.vmem %s1809_s8, 16  ;;  %s1359_s14 = sshll.u32 %s1435_s19, 4  ;;  %s1360_s14 = int_to_ptr.vmem [resolvable:$false] %s1359_s14 }
 0x1b6   : > { %p1356_p11 = scmp.ne.s32.totalorder %s1809_s8, %s1355_s12  ;;  %p1362_p0 = scmp.lt.s32.totalorder %s1809_s8, %s1360_s14 }
 0x1b8   : > { %p1357_p12 = pnand %p1356_p11, %p1499_p5 }
 0x1b9   : > { %974 = vrot.lane.b32.xlu1 %v916_v24, %s1432_s20  ;;  %969 = vrot.lane.b32.xlu0 %v916_v24, %s1433_s23 }
 0x1ba   : > { %p1358_p13 = pneg %p1357_p12 }
 0x1bd   : > { %982 = vrot.lane.b32.xlu1 %v927_v30, %s1434_s27  ;;  %976 = vrot.lane.b32.xlu0 %v927_v30, %s1432_s20  ;;  %s1361_s20 = scalar_lea.vmem %s1360_s14, 32 }
 0x1be   : > { %p1363_p1 = scmp.lt.s32.totalorder %s1361_s20, %s1355_s12 }
 0x1c0   : > { %p1364_p2 = por %p1363_p1, %p1362_p0 }
 0x1c2   : > { %p1365_p3 = pnand %p1364_p2, %p1358_p13 }
 0x217   : > { %v934_v31 = vpop.permute.xlu1 %933  ;;  %v930_v32 = vpop.permute.xlu0 %929 }
 0x218   : > { %v932_v33 = vadd.f32 %v930_v32, %v916_v24 }
 0x21a   : > { %v936_v34 = vadd.f32 %v934_v31, %v932_v33 }
 0x21b   : > { %v942_v35 = vpop.permute.xlu1 %941  ;;  %v938_v36 = vpop.permute.xlu0 %937 }
 0x21c   : > { %v940_v37 = vadd.f32 %v938_v36, %v936_v34 }
 0x21e   : > { %v944_v38 = vadd.f32 %v942_v35, %v940_v37 }
 0x21f   : > { %v950_v39 = vpop.permute.xlu1 %949  ;;  %v946_v40 = vpop.permute.xlu0 %945 }
 0x220   : > { %v948_v41 = vadd.f32 %v946_v40, %v944_v38 }
 0x222   : > { %v952_v42 = vadd.f32 %v950_v39, %v948_v41 }
 0x223   : > { %v958_v43 = vpop.permute.xlu1 %957  ;;  %v954_v44 = vpop.permute.xlu0 %953 }
 0x224   : > { %v956_v45 = vadd.f32 %v954_v44, %v952_v42 }
 0x226   : > { %v960_v46 = vadd.f32 %v958_v43, %v956_v45 }
 0x227   : > { %v966_v47 = vpop.permute.xlu1 %965  ;;  %v962_v48 = vpop.permute.xlu0 %961 }
 0x228   : > { %v964_v49 = vadd.f32 %v962_v48, %v960_v46 }
 0x22a   : > { %v968_v50 = vadd.f32 %v966_v47, %v964_v49 }
 0x22b   : > { %v970_v51 = vpop.permute.xlu0 %969  ;;  %v975_v52 = vpop.permute.xlu1 %974 }
 0x22c   : > { %v972_v53 = vadd.f32 %v970_v51, %v968_v50 }
 0x22f   : > { %v977_v54 = vpop.permute.xlu0 %976  ;;  %v983_v57 = vpop.permute.xlu1 %982 }
 0x230   : > { %v979_v55 = vsel %vm978_vm7, %v975_v52, %v977_v54 }
 0x231   : > { %v981_v56 = vadd.f32 %v979_v55, %v972_v53 }
 0x233   : > { %v985_v59 = vadd.f32 %v983_v57, %v981_v56 }
 0x235   : > { %v987_v61 = vmul.f32 %v986_v58, %v985_v59 }
 0x237   : > { %v989_v62 = vadd.f32 %v988_v60, %v987_v61 }
 0x239   : > { %v991_v63 = vsel %vm990_vm8, %v989_v62, -inf }
 0x23a   : > { %992 = vmax.xlane.f32.xlu0 %v991_v63 }
 0x2c7   : > { %v993_v0 = vpop.xlane.xlu0 %992 }
 0x2c8   : > { %v994_v1 = vsub.f32 %v989_v62, %v993_v0 }
 0x2ca   : > { %v995_v2 = vmul.f32 1.442695, %v994_v1 }
 0x2cc   : > { %1351 = vpow2.f32 %v995_v2 }
 0x2d6   : > { %v1352_v3 = vpop.eup %1351 }
 0x2d7   : > { %v997_v4 = vsel %vm990_vm8, %v1352_v3, 0.0 }
 0x2d8   : > { %998 = vadd.xlane.f32.xlu1 %v997_v4 }
 0x365   : > { %v999_v5 = vpop.xlane.xlu1 %998 }
 0x366   : > { %1353 = vlog2.f32 %v999_v5 }
 0x370   : > { %v1354_v6 = vpop.eup %1353 }
 0x371   : > { %v1001_v7 = vmul.f32 0.6931472, %v1354_v6 }
 0x373   : > { %v1002_v8 = vsub.f32 %v994_v1, %v1001_v7 }
 0x375   : > { %1003 = vst.msk [vmem:[%s189_s7] sm:$0x1] %vm990_vm8, %v1002_v8 }
 0x376   : > { %1368 = shalt.err (!%p1365_p3)
}
 0x377   : > { %s1369_s23 = scalar_lea.hbm %s1807_s10, 16  ;;  %s1373_s29 = scalar_lea.hbm %s1854_s4, 32 }
 0x378   : > { %p1370_p4 = scmp.ne.s32.totalorder %s1807_s10, %s1369_s23  ;;  %p1374_p9 = scmp.lt.u32.totalorder %s1807_s10, %s1854_s4 }
 0x379   : > { %p1375_p10 = scmp.lt.u32.totalorder %s1373_s29, %s1369_s23  ;;  %p1377_p12 = scmp.lt.u32.totalorder %s1369_s23, %s1807_s10 }
 0x37a   : > { %p1371_p7 = pnand %p1370_p4, %p1499_p5 }
 0x37b   : > { %p1376_p11 = por %p1375_p10, %p1374_p9 }
 0x37c   : > { %p1372_p8 = pneg %p1371_p7 }
 0x37d   : > { %p1378_p13 = por %p1377_p12, %p1376_p11 }
 0x37f   : > { %p1379_p0 = pnand %p1378_p13, %p1372_p8 }
 0x381   : > { %1382 = shalt.err (!%p1379_p0)
}
 0x382   : > { %1179 = dma.vmem_to_hbm [thread:$0]  (%p1499_p5), %s1809_s8, 16, %s1807_s10, %s1005_s11  }
 0x383 PF: > { %p1185_p1 = scmp.ge.s32.totalorder %s1417_s18, 2  ;;  %s1029_s5 = sand.u32 1, %s1405_s15  }
 0x384   : > { %s1030_s6 = scalar_lea.sflag [#allocation4], %s1029_s5 }
 0x385   : > { %p1182_p2 = pnand %p1185_p1, %p1503_p6 }
 0x387   : > { %1400 = dma.done.wait (!%p1182_p2), %s1030_s6, 16  }
 0x388   : > { %1402 = vsyncadd (!%p1182_p2), %s1030_s6, 4294967280  ;;  %p14_p3 = scmp.ge.s32.totalorder %s1486_s21, 4   ;;  %s1857_s15 = smov %s1409_s16 }
 0x389   : > { %s1858_s16 = smov %s1413_s17  ;;  %s1859_s17 = smov %s1497_s24 }
 0x38a   : > { %s1860_s18 = smov %s1486_s21  ;;  %16 = sbr.rel (!%p14_p3) target bundleno = 3 (0x3), region = 78 }
 0x391   :  { %1034 = vsyncpa [#allocation4], 1 }
 0x392   :  { %1036 = vsyncpa [#allocation4 + $0x1], 1 }

</bundles_post_ra>
